<compile_context>
chip_gen: v6e
topology: v6e:2x2x1
jax: 0.10.0
libtpu: 0.0.40
codegen_flags: <defaults>
</compile_context>

<pallas_src>
import math
import numpy as np
import jax
import jax.numpy as jnp
from jax.experimental import pallas as pl
from jax.experimental.pallas import tpu as pltpu


def _round_up(x, m):
    return ((x + m - 1) // m) * m


# -----------------------------------------------------------------------------
# Deterministic parameter construction (mirrors sin_fr_layer.__init__)
# -----------------------------------------------------------------------------
def init_bases(in_features, high_freq_num, low_freq_num, phi_num, alpha):
    phi_set = np.array([2.0 * math.pi * i / phi_num for i in range(phi_num)])
    high_freq = np.array([i + 1 for i in range(high_freq_num)], dtype=np.float64)
    low_freq = np.array([(i + 1) / low_freq_num for i in range(low_freq_num)],
                        dtype=np.float64)
    if len(low_freq) != 0:
        T_max = 2.0 * math.pi / low_freq[0]
    else:
        T_max = 2.0 * math.pi / high_freq.min()
    points = np.linspace(-T_max / 2.0, T_max / 2.0, in_features)

    m = (high_freq_num + low_freq_num) * phi_num
    bases = np.empty((m, in_features), dtype=np.float32)
    i = 0
    for freq in low_freq:
        for phi in phi_set:
            bases[i, :] = np.cos(freq * points + phi).astype(np.float32)
            i += 1
    for freq in high_freq:
        for phi in phi_set:
            bases[i, :] = np.cos(freq * points + phi).astype(np.float32)
            i += 1
    return alpha * bases


def init_lamb(key, out_features, bases, omega_0):
    m = bases.shape[0]
    norms = np.linalg.norm(bases, ord=2, axis=1)                      # per-row L2
    bounds = (np.sqrt(6.0 / m) / norms / omega_0).astype(np.float32)  # [m]
    u = jax.random.uniform(key, (out_features, m), dtype=jnp.float32,
                           minval=-1.0, maxval=1.0)
    return u * jnp.asarray(bounds)[None, :]                           # col i in [-b_i, b_i]


# -----------------------------------------------------------------------------
# Init-time parameter fusion: fold the param-only matmul, omega_0 and lane pad.
# -----------------------------------------------------------------------------
def fuse_params(lamb, bases, bias, omega_0, lane_multiple=128):
    """Returns (weight_t [in, out_pad], bias_row [1, out_pad], out_features)."""
    lamb = jnp.asarray(lamb, jnp.float32)
    bases = jnp.asarray(bases, jnp.float32)
    bias = jnp.asarray(bias, jnp.float32)

    weight_t = (lamb @ bases).T * omega_0          # [in, out], omega folded
    bias_row = bias.T * omega_0                    # [out,1] -> [1,out], omega folded
    out_features = weight_t.shape[1]
    out_pad = _round_up(out_features, lane_multiple)
    if out_pad != out_features:                    # lane-dense padding (zeros)
        weight_t = jnp.pad(weight_t, ((0, 0), (0, out_pad - out_features)))
        bias_row = jnp.pad(bias_row, ((0, 0), (0, out_pad - out_features)))
    return weight_t, bias_row, out_features


# -----------------------------------------------------------------------------
# Pallas kernel:  y = sin(x @ weight_t + bias)
# -----------------------------------------------------------------------------
def sin_fr_kernel(x_ref, w_ref, b_ref, o_ref):
    acc = jnp.dot(x_ref[...], w_ref[...], preferred_element_type=jnp.float32)
    o_ref[...] = jnp.sin(acc + b_ref[...])


def sin_fr_forward(x, weight_t, bias_row, out_features, *, block_batch=256):
    x = jnp.asarray(x, jnp.float32)
    batch, in_features = x.shape
    assert weight_t.shape[0] == in_features
    out_pad = weight_t.shape[1]

    # Batch tiling: block of up to `block_batch` rows (multiple of 8 sublanes),
    # padded to a full grid so every tile is full-size.
    bb = min(_round_up(block_batch, 8), _round_up(batch, 8))
    batch_pad = _round_up(batch, bb)
    if batch_pad != batch:
        x = jnp.pad(x, ((0, batch_pad - batch), (0, 0)))
    grid = (batch_pad // bb,)

    out = pl.pallas_call(
        sin_fr_kernel,
        out_shape=jax.ShapeDtypeStruct((batch_pad, out_pad), jnp.float32),
        grid_spec=pltpu.PrefetchScalarGridSpec(
            num_scalar_prefetch=0,
            grid=grid,
            in_specs=[
                pl.BlockSpec((bb, in_features), lambda i: (i, 0)),        # x tile
                pl.BlockSpec((in_features, out_pad), lambda i: (0, 0)),   # weight (grid-invariant)
                pl.BlockSpec((1, out_pad), lambda i: (0, 0)),             # bias   (grid-invariant)
            ],
            out_specs=pl.BlockSpec((bb, out_pad), lambda i: (i, 0)),
        ),
        compiler_params=pltpu.CompilerParams(
            dimension_semantics=("parallel",)),   # shard batch across TCs on v7x
    )(x, weight_t, bias_row)

    # Slice padding back off only when padding was actually applied.
    if batch_pad != batch or out_pad != out_features:
        out = out[:batch, :out_features]
    return out


# -----------------------------------------------------------------------------
# Main
# -----------------------------------------------------------------------------
if __name__ == "__main__":
    # Module hyperparameters (small, consistent with the forward pass)
    in_features = 64
    out_features = 32
    high_freq_num = 3
    low_freq_num = 2
    phi_num = 4
    alpha = 0.05
    omega_0 = 30.0
    batch = 8

    key = jax.random.PRNGKey(0)
    k_x, k_lamb, k_bias = jax.random.split(key, 3)

    bases_np = init_bases(in_features, high_freq_num, low_freq_num, phi_num, alpha)
    bases = jnp.asarray(bases_np)                                  # [M, in]
    lamb = init_lamb(k_lamb, out_features, bases_np, omega_0)      # [out, M]
    bias = jnp.zeros((out_features, 1), dtype=jnp.float32)         # [out, 1] (module init)

    x = jax.random.normal(k_x, (batch, in_features), dtype=jnp.float32)

    def reference(x, lamb, bases, bias):
        weight = lamb @ bases
        return jnp.sin(omega_0 * (x @ weight.T + bias.T))

    # --- run with module-faithful zero bias ---
    w_t, b_row, out_f = fuse_params(lamb, bases, bias, omega_0)
    y = sin_fr_forward(x, w_t, b_row, out_f)
    y = jax.block_until_ready(y)
    y_ref = reference(x, lamb, bases, bias)
    assert y.shape == (batch, out_features)
    assert jnp.allclose(y, y_ref, atol=2e-4, rtol=1e-4), "mismatch vs reference (zero bias)"

    # --- extra check: nonzero bias to actually exercise the bias-add path ---
    bias_nz = 0.1 * jax.random.normal(k_bias, (out_features, 1), dtype=jnp.float32)
    w_t2, b_row2, _ = fuse_params(lamb, bases, bias_nz, omega_0)
    y2 = jax.block_until_ready(sin_fr_forward(x, w_t2, b_row2, out_f))
    y2_ref = reference(x, lamb, bases, bias_nz)
    assert jnp.allclose(y2, y2_ref, atol=2e-4, rtol=1e-4), "mismatch vs reference (nonzero bias)"

    # --- extra check: non-aligned batch to exercise the padding/slice path ---
    x3 = jax.random.normal(k_bias, (13, in_features), dtype=jnp.float32)
    y3 = jax.block_until_ready(sin_fr_forward(x3, w_t, b_row, out_f))
    y3_ref = reference(x3, lamb, bases, bias)
    assert y3.shape == (13, out_features)
    assert jnp.allclose(y3, y3_ref, atol=2e-4, rtol=1e-4), "mismatch vs reference (padded batch)"

    print("KERNEL_OK")
</pallas_src>

<mosaic_0001>
module attributes {stable_mosaic.version = 11 : i64} {
  func.func @sin_fr_kernel(%arg0: i32, %arg1: memref<8x64xf32, #tpu.memory_space<vmem>>, %arg2: memref<64x128xf32, #tpu.memory_space<vmem>>, %arg3: memref<1x128xf32, #tpu.memory_space<vmem>>, %arg4: memref<8x128xf32, #tpu.memory_space<vmem>>) attributes {dimension_semantics = [#tpu.dimension_semantics<parallel>], iteration_bounds = array<i64: 1>, scalar_prefetch = 0 : i64, scratch_operands = 0 : i64, tpu.core_type = #tpu.core_type<tc>, window_params = [{transform_indices = @transform_0, window_bounds = array<i64: 8, 64>}, {pipeline_mode = #tpu.pipeline_mode<synchronous>, transform_indices = @transform_1, window_bounds = array<i64: 64, 128>}, {pipeline_mode = #tpu.pipeline_mode<synchronous>, transform_indices = @transform_2, window_bounds = array<i64: 1, 128>}, {transform_indices = @transform_3, window_bounds = array<i64: 8, 128>}]} {
    %c0 = arith.constant 0 : index
    %c0_0 = arith.constant 0 : index
    %0 = vector.load %arg1[%c0, %c0_0] : memref<8x64xf32, #tpu.memory_space<vmem>>, vector<8x64xf32>
    %c0_1 = arith.constant 0 : index
    %c0_2 = arith.constant 0 : index
    %1 = vector.load %arg2[%c0_1, %c0_2] : memref<64x128xf32, #tpu.memory_space<vmem>>, vector<64x128xf32>
    %cst = arith.constant dense<0.000000e+00> : vector<8x128xf32>
    %2 = tpu.matmul %0, %1, %cst {dimension_numbers = #tpu.dot_dimension_numbers<[1], [0], [0], [1], [0, 0, 1, 1], [], []>} : vector<8x64xf32>, vector<64x128xf32>, vector<8x128xf32> -> vector<8x128xf32>
    %c0_3 = arith.constant 0 : index
    %c0_4 = arith.constant 0 : index
    %3 = vector.load %arg3[%c0_3, %c0_4] : memref<1x128xf32, #tpu.memory_space<vmem>>, vector<1x128xf32>
    %4 = vector.broadcast %3 : vector<1x128xf32> to vector<8x128xf32>
    %5 = arith.addf %2, %4 : vector<8x128xf32>
    %6 = math.sin %5 : vector<8x128xf32>
    %c0_5 = arith.constant 0 : index
    %c0_6 = arith.constant 0 : index
    %7 = vector.load %arg4[%c0_5, %c0_6] : memref<8x128xf32, #tpu.memory_space<vmem>>, vector<8x128xf32>
    tpu.vector_store %arg4[%c0_5, %c0_6], %6 {strides = array<i32>} : memref<8x128xf32, #tpu.memory_space<vmem>>, vector<8x128xf32>,
    return
  }
  func.func @transform_0(%arg0: i32) -> (i32, i32) {
    %c0_i32 = arith.constant 0 : i32
    %c0_i32_0 = arith.constant 0 : i32
    return %arg0, %c0_i32 : i32, i32
  }
  func.func @transform_1(%arg0: i32) -> (i32, i32) {
    %c0_i32 = arith.constant 0 : i32
    %c0_i32_0 = arith.constant 0 : i32
    %c0_i32_1 = arith.constant 0 : i32
    return %c0_i32, %c0_i32_0 : i32, i32
  }
  func.func @transform_2(%arg0: i32) -> (i32, i32) {
    %c0_i32 = arith.constant 0 : i32
    %c0_i32_0 = arith.constant 0 : i32
    %c0_i32_1 = arith.constant 0 : i32
    return %c0_i32, %c0_i32_0 : i32, i32
  }
  func.func @transform_3(%arg0: i32) -> (i32, i32) {
    %c0_i32 = arith.constant 0 : i32
    %c0_i32_0 = arith.constant 0 : i32
    return %arg0, %c0_i32 : i32, i32
  }
}

</mosaic_0001>

<bundles_post_ra>
// kernel: tpu_custom_call.1
= control target key start
LH: loop header
LB: loop body
LE: loop exit
PB: predicated region body
PF: predicated region fallthrough
CT: control target
= control target key end

     0   :  { %8 = vsyncpa [#allocation3], 0  ;;  %s439_s0 = inlined_call_operand.hbm [shape: f32[8,64], index: 0, kind: input, shape index: {}]   ;;  %s440_s1 = inlined_call_operand.hbm [shape: f32[64,128], index: 1, kind: input, shape index: {}]   ;;  %s441_s2 = inlined_call_operand.vmem [shape: f32[1,128], index: 2, kind: input, shape index: {}]   ;;  %s442_s3 = inlined_call_operand.hbm [shape: f32[8,128], index: 3, kind: output, shape index: {}]  }
   0x1   :  { %9 = vsyncpa [#allocation6], 0 }
   0x2   :  { %10 = vsyncpa [#allocation4], 0  ;;  %s373_s12 = smov [#allocation2]   ;;  %s374_s14 = smov [#allocation5]  }
   0x3   :  { %s17_s13 = sshll.u32 %s373_s12, 4  ;;  %s26_s15 = sshll.u32 %s374_s14, 4  ;;  %s18_s13 = int_to_ptr.vmem [resolvable:$true] %s17_s13  ;;  %s27_s15 = int_to_ptr.vmem [resolvable:$true] %s26_s15 }
   0x4   :  { %s315_s16 = scalar_lea.vmem %s18_s13, 128  ;;  %p320_p1 = scmp.lt.s32.totalorder %s18_s13, %s18_s13 }
   0x5   :  { %p316_p0 = scmp.ne.s32.totalorder %s18_s13, %s315_s16  ;;  %p321_p2 = scmp.lt.s32.totalorder %s315_s16, %s315_s16 }
   0x7   :  { %p322_p3 = por %p321_p2, %p320_p1 }
   0x9   :  { %p323_p4 = pnand %p322_p3, %p316_p0 }
   0xb   :  { %326 = shalt.err (!%p323_p4)
}
   0xc   :  { %20 = dma.hbm_to_vmem [thread:$0]  %s439_s0, 128, %s18_s13, [#allocation3]  }
   0xd   :  { %s335_s19 = scalar_lea.vmem %s27_s15, 1024  ;;  %p340_p6 = scmp.lt.s32.totalorder %s27_s15, %s27_s15 }
   0xe   :  { %p336_p5 = scmp.ne.s32.totalorder %s27_s15, %s335_s19  ;;  %p341_p7 = scmp.lt.s32.totalorder %s335_s19, %s335_s19 }
  0x10   :  { %p342_p8 = por %p341_p7, %p340_p6 }
  0x12   :  { %p343_p9 = pnand %p342_p8, %p336_p5 }
  0x14   :  { %346 = shalt.err (!%p343_p9)
}
  0x15   :  { %s375_s20 = smov 128   ;;  %s376_s21 = smov 8  }
  0x16   :  { %32 = dma.hbm_to_vmem [thread:$0]  %s440_s1, 1024, %s27_s15, [#allocation6], %s375_s20, %s375_s20, %s376_s21  }
  0x17   :  { %367 = dma.done.wait [#allocation3], 128  }
  0x18   :  { %368 = vsyncadd [#allocation3], 4294967168 }
  0x19   :  { %369 = dma.done.wait [#allocation6], 1024  }
  0x1a   :  { %370 = vsyncadd [#allocation6], 4294966272  ;;  %v377_v0 = vmov 0.0   ;;  %vm378_vm0 = vmmov 0   ;;  %v49_v1 = vld [vmem:[#allocation5 + $0x38] sm:$0xff]  ;;  %v48_v2 = vld [vmem:[#allocation5 + $0x30] sm:$0xff] }
  0x1b   :  { %267 = vmatprep.subr.mxu0 %v377_v0  ;;  %283 = vmatprep.mubr.msk.f32.mxu0 %vm378_vm0, %v377_v0  ;;  %v47_v3 = vld [vmem:[#allocation5 + $0x28] sm:$0xff]  ;;  %v46_v4 = vld [vmem:[#allocation5 + $0x20] sm:$0xff]  ;;  %v45_v5 = vld [vmem:[#allocation5 + $0x18] sm:$0xff]  ;;  %vm57_vm1 = vcmask 523264   ;;  %v379_v24 = vmov 683565275  }
  0x1c   :  { %268 = vmatpush3.msra.mxu0 %v49_v1  ;;  %v44_v6 = vld [vmem:[#allocation5 + $0x10] sm:$0xff]  ;;  %v43_v7 = vld [vmem:[#allocation5 + $0x8] sm:$0xff]  ;;  %v42_v8 = vld [vmem:[#allocation5] sm:$0xff]  ;;  %v380_v26 = vmov 2475754826  }
  0x1d   :  { %269 = vmatprep.subr.mxu0 %v377_v0  ;;  %v41_v9 = vld [vmem:[#allocation2] sm:$0xff]  ;;  %v381_v29 = vmov 2131351028   ;;  %v382_v32 = vmov 2102212464  }
  0x1e   :  { %270 = vmatpush3.msra.mxu0 %v48_v2  ;;  %v252_v10 = vld [vmem:[%s441_s2] ss:$0 sm:$0xff]  ;;  %v383_v35 = vmov 920167782   ;;  %v384_v38 = vmov 1326507024  }
  0x1f   :  { %271 = vmatprep.subr.mxu0 %v377_v0  ;;  %s385_s2 = smov [#allocation7]  }
  0x20   :  { %272 = vmatpush3.msra.mxu0 %v47_v3  ;;  %s242_s24 = sshll.u32 %s385_s2, 4  ;;  %s243_s24 = int_to_ptr.vmem [resolvable:$true] %s242_s24 }
  0x21   :  { %273 = vmatprep.subr.mxu0 %v377_v0  ;;  %s347_s25 = scalar_lea.vmem %s243_s24, 128  ;;  %p352_p11 = scmp.lt.s32.totalorder %s243_s24, %s243_s24 }
  0x22   :  { %274 = vmatpush3.msra.mxu0 %v46_v4  ;;  %p348_p10 = scmp.ne.s32.totalorder %s243_s24, %s347_s25  ;;  %p353_p12 = scmp.lt.s32.totalorder %s347_s25, %s347_s25 }
  0x23   :  { %275 = vmatprep.subr.mxu0 %v377_v0 }
  0x24   :  { %276 = vmatpush3.msra.mxu0 %v45_v5  ;;  %p354_p13 = por %p353_p12, %p352_p11 }
  0x25   :  { %277 = vmatprep.subr.mxu0 %v377_v0 }
  0x26   :  { %278 = vmatpush3.msra.mxu0 %v44_v6  ;;  %p355_p0 = pnand %p354_p13, %p348_p10 }
  0x27   :  { %279 = vmatprep.subr.mxu0 %v377_v0 }
  0x28   :  { %280 = vmatpush3.msra.mxu0 %v43_v7 }
  0x29   :  { %281 = vmatprep.subr.mxu0 %v377_v0 }
  0x2a   :  { %282 = vmatpush3.msra.mxu0 %v42_v8 }
  0x2b   :  { %284 = vmatmul.mubr.msk.f32.vlgmr.msra.gmra.mxu0 %vm57_vm1, %v41_v9 }
  0xeb   :  { %v127_v11 = vpop.f32.mrf.mxu0 }
  0xec   :  { %v415_v12 = vadd.f32 %v252_v10, %v127_v11 }
  0xed   :  { %v285_v13 = vpop.f32.mrf.mxu0 }
  0xee   :  { %v134_v14 = vand.u32 2139095040, %v415_v12  ;;  %v131_v18 = vand.u32 2147483647, %v415_v12  ;;  %vm133_vm9 = vcmp.lt.s32.totalorder %v415_v12, 0  ;;  %vm223_vm14 = vweird.f32 %v415_v12 }
  0xf0   :  { %v135_v15 = vshrl.u32 %v134_v14, 23  ;;  %v138_v21 = vand.u32 8388607, %v131_v18  ;;  %vm132_vm10 = vcmp.le.f32.partialorder %v131_v18, 0.7853982 }
  0xf2   :  { %v254_v16 = vadd.s32 4294967169, %v135_v15  ;;  %v139_v40 = vor.u32 8388608, %v138_v21 }
  0xf4   :  { %v141_v17 = vadd.s32 1, %v254_v16  ;;  %v179_v54 = vshll.u32 %v139_v40, 8 }
  0xf6   :  { %vm142_vm2 = vcmp.gt.s32.totalorder %v141_v17, 0 }
  0xf7   :  { %v143_v19 = vsel %vm142_vm2, %v141_v17, 0 }
  0xf8   :  { %v145_v20 = vand.u32 31, %v143_v19  ;;  %v144_v23 = vshrl.u32 %v143_v19, 5 }
  0xfa   :  { %v146_v22 = vsub.s32 32, %v145_v20  ;;  %v148_v25 = vshll.u32 %v379_v24, %v145_v20  ;;  %v151_v27 = vshll.u32 %v380_v26, %v145_v20  ;;  %v154_v31 = vshll.u32 %v381_v29, %v145_v20 }
  0xfb   :  { %v157_v34 = vshll.u32 %v382_v32, %v145_v20  ;;  %v160_v37 = vshll.u32 %v383_v35, %v145_v20  ;;  %vm163_vm3 = vcmp.lt.s32.totalorder %v144_v23, 1  ;;  %vm166_vm4 = vcmp.lt.s32.totalorder %v144_v23, 4 }
  0xfc   :  { %v149_v28 = vshrl.u32 %v380_v26, %v146_v22  ;;  %v152_v30 = vshrl.u32 %v381_v29, %v146_v22  ;;  %v155_v33 = vshrl.u32 %v382_v32, %v146_v22  ;;  %v158_v36 = vshrl.u32 %v383_v35, %v146_v22 }
  0xfd   :  { %v161_v39 = vshrl.u32 %v384_v38, %v146_v22  ;;  %v147_v49 = vshrl.u32 %v379_v24, %v146_v22  ;;  %vm165_vm5 = vcmp.lt.s32.totalorder %v144_v23, 3  ;;  %vm164_vm6 = vcmp.lt.s32.totalorder %v144_v23, 2 }
  0xfe   :  { %v150_v41 = vor.u32 %v149_v28, %v148_v25  ;;  %v153_v42 = vor.u32 %v152_v30, %v151_v27  ;;  %v156_v43 = vor.u32 %v155_v33, %v154_v31  ;;  %v159_v44 = vor.u32 %v158_v36, %v157_v34 }
  0xff   :  { %v162_v45 = vor.u32 %v161_v39, %v160_v37 }
 0x100   :  { %v168_v46 = vsel %vm166_vm4, %v156_v43, 2102212464  ;;  %v171_v47 = vsel %vm163_vm3, %v150_v41, %v153_v42  ;;  %v175_v48 = vsel %vm163_vm3, %v153_v42, %v156_v43  ;;  %v172_v50 = vsel %vm166_vm4, %v159_v44, 920167782 }
 0x101   :  { %v176_v51 = vsel %vm166_vm4, %v162_v45, 1326507024  ;;  %v173_v52 = vsel %vm165_vm5, %v156_v43, %v172_v50  ;;  %v167_v55 = vsel %vm163_vm3, %v147_v49, %v150_v41  ;;  %v169_v56 = vsel %vm165_vm5, %v153_v42, %v168_v46 }
 0x102   :  { %v177_v53 = vsel %vm165_vm5, %v159_v44, %v176_v51  ;;  %v174_v57 = vsel %vm164_vm6, %v171_v47, %v173_v52  ;;  %v170_v63 = vsel %vm164_vm6, %v167_v55, %v169_v56 }
 0x103   :  { %v178_v58 = vsel %vm164_vm6, %v175_v48, %v177_v53  ;;  %v424_v61 = vmul.u32.u64.low %v179_v54, %v174_v57  ;;  %v425_v62 = vmul.u32.u64.high %v179_v54, %v174_v57, %v424_v61  ;;  %v186_v1 = vmul.u32 %v179_v54, %v170_v63 }
 0x104   :  { %v421_v59 = vmul.u32.u64.low %v179_v54, %v178_v58  ;;  %v422_v60 = vmul.u32.u64.high %v179_v54, %v178_v58, %v421_v59 }
 0x105   :  { %v189_v0 = vadd.s32 1, %v425_v62 }
 0x106   :  { %vm188_vm7 = vc.u32 %v422_v60, %v424_v61  ;;  %v187_v14 = vadd.s32 %v424_v61, %v422_v60 }
 0x107   :  { %v190_v2 = vsel %vm188_vm7, %v189_v0, %v425_v62 }
 0x108   :  { %v191_v3 = vadd.s32 %v190_v2, %v186_v1 }
 0x10a   :  { %v192_v4 = vadd.s32 536870912, %v191_v3 }
 0x10c   :  { %v193_v5 = vshrl.u32 %v192_v4, 30 }
 0x10e   :  { %v194_v6 = vshll.u32 %v193_v5, 30  ;;  %v217_v28 = vsub.s32 4, %v193_v5 }
 0x110   :  { %v195_v7 = vsub.s32 %v191_v3, %v194_v6  ;;  %v218_v31 = vsel %vm133_vm9, %v217_v28, %v193_v5 }
 0x111   :  { %v220_v32 = vsel %vm132_vm10, 0, %v218_v31 }
 0x112   :  { %v197_v8 = vsub.s32 0, %v195_v7  ;;  %v224_v33 = vadd.s32 3, %v220_v32 }
 0x114   :  { %v255_v9 = vmin.u32 %v197_v8, %v195_v7  ;;  %v225_v34 = vand.u32 3, %v224_v33 }
 0x116   :  { %v199_v10 = vclz %v255_v9  ;;  %vm230_vm11 = vcmp.eq.s32.totalorder %v225_v34, 2  ;;  %vm227_vm12 = vcmp.eq.s32.totalorder %v225_v34, 0  ;;  %vm226_vm13 = vcmp.lt.s32.totalorder %v225_v34, 2 }
 0x118   :  { %v256_v11 = vadd.s32 4294967294, %v199_v10 }
 0x11a   :  { %vm257_vm8 = vcmp.lt.s32.totalorder %v256_v11, 0 }
 0x11b   :  { %v202_v13 = vsel %vm257_vm8, 0, %v256_v11 }
 0x11c   :  { %v203_v15 = vsub.s32 32, %v202_v13  ;;  %v207_v16 = vsub.s32 4294967266, %v202_v13  ;;  %v204_v17 = vshll.u32 %v195_v7, %v202_v13 }
 0x11e   :  { %v205_v19 = vshrl.u32 %v187_v14, %v203_v15  ;;  %v208_v20 = vadd.s32 127, %v207_v16 }
 0x120   :  { %v206_v21 = vor.u32 %v205_v19, %v204_v17  ;;  %v209_v22 = vshll.u32 %v208_v20, 23 }
 0x122   :  { %v210_v23 = vor.u32 4788187, %v209_v22  ;;  %v213_v25 = vcvt.s32.f32 %v206_v21 }
 0x124   :  { %v211_v24 = vand.u32 2147483647, %v210_v23 }
 0x126   :  { %v214_v26 = vmul.f32 %v213_v25, %v211_v24 }
 0x128   :  { %v215_v27 = vxor.u32 2147483648, %v214_v26 }
 0x12a   :  { %v216_v29 = vsel %vm133_vm9, %v215_v27, %v214_v26 }
 0x12b   :  { %v219_v30 = vsel %vm132_vm10, %v415_v12, %v216_v29 }
 0x12c   :  { %303 = vcosq.f32 %v219_v30 }
 0x12d   :  { %305 = vsinq.f32 %v219_v30 }
 0x139   :  { %v304_v35 = vpop.eup %303 }
 0x13a   :  { %v306_v36 = vpop.eup %305  ;;  %v231_v37 = vxor.u32 2147483648, %v304_v35 }
 0x13b   :  { %v228_v38 = vxor.u32 2147483648, %v306_v36 }
 0x13c   :  { %v232_v39 = vsel %vm230_vm11, %v231_v37, %v306_v36 }
 0x13d   :  { %v229_v40 = vsel %vm227_vm12, %v304_v35, %v228_v38 }
 0x13e   :  { %v233_v18 = vsel %vm226_vm13, %v229_v40, %v232_v39 }
 0x13f   :  { %v234_v41 = vsel %vm223_vm14, nan, %v233_v18 }
 0x140   :  { %235 = vst [vmem:[#allocation7] sm:$0xff] %v234_v41 }
 0x141   :  { %358 = shalt.err (!%p355_p0)
}
 0x142   :  { %245 = dma.vmem_to_hbm [thread:$0]  %s243_s24, 128, %s442_s3, [#allocation4]  }
 0x143   :  { %371 = dma.done.wait [#allocation4], 128  }
 0x144   :  { %372 = vsyncadd [#allocation4], 4294967168 }
 0x145   :  { %249 = vsyncpa [#allocation3], 1 }
 0x146   :  { %250 = vsyncpa [#allocation6], 1 }
 0x147   :  { %251 = vsyncpa [#allocation4], 1 }

</bundles_post_ra>
